<compile_context>
chip_gen: v6e
topology: v6e:2x2x1
jax: 0.10.0
libtpu: 0.0.40
codegen_flags: <defaults>
</compile_context>

<pallas_src>
import math

import jax
import jax.numpy as jnp
from jax.experimental import pallas as pl
from jax.experimental.pallas import tpu as pltpu

HIDDEN_DIM = 64
MAX_TB = 1024  # max batch tile (lane axis); multiple of 128, sweet spot 512-2048


def _silu(h):
    # SiLU with a single EUP transcendental: sigmoid(h) = 0.5*(tanh(0.5*h) + 1).
    return h * (0.5 * (jnp.tanh(0.5 * h) + 1.0))


def _mlp_kernel(xt_ref, w1t_ref, b1_ref, w2t_ref, b2_ref, w3t_ref, b3_ref,
                out_ref):
    # xt_ref: (2, TB) -- row 0 = x, row 1 = t (batch on the lane axis)
    x_row = xt_ref[0:1, :]                  # (1, TB)
    t_row = xt_ref[1:2, :]                  # (1, TB)

    # ---- Layer 1: Linear(2 -> H) + SiLU as VPU broadcast FMAs ----
    # h1[h, b] = w1[0, h] * x[b] + w1[1, h] * t[b] + b1[h]
    w1t = w1t_ref[...]                      # (H, 2) = w1.T
    h1 = w1t[:, 0:1] * x_row + w1t[:, 1:2] * t_row + b1_ref[...]
    h1 = _silu(h1)                          # (H, TB)

    # ---- Layer 2: Linear(H -> H) + SiLU on the MXU: (H,H)@(H,TB) ----
    h2 = jnp.dot(w2t_ref[...], h1, preferred_element_type=jnp.float32) + b2_ref[...]
    h2 = _silu(h2)

    # ---- Layer 3: Linear(H -> 1): (1,H)@(H,TB) -> lane-dense (1,TB) ----
    out = jnp.dot(w3t_ref[...], h2, preferred_element_type=jnp.float32) + b3_ref[...]
    out_ref[...] = out.astype(out_ref.dtype)


def _choose_batch_tile(B, max_tb=MAX_TB):
    """Lane tile: as large as possible (<= max_tb, multiple of 128) while keeping
    >= 2 grid steps when the batch allows (v7x shards the 'parallel' axis over
    its 2 TensorCores); v5e/v6e simply benefit from the bigger tile."""
    b128 = 128 * ((B + 127) // 128)
    if b128 <= 128:
        return 128
    two_step = 128 * ((b128 + 255) // 256)   # smallest TB giving exactly 2 steps
    return min(max_tb, two_step)


def simple_flow_1d(x, t, params):
    """Forward pass matching SimpleFlow1D.forward.

    Args:
      x: [B, 1] spatial location
      t: scalar, [B] or [B, 1] time
      params: dict of (w1, b1, w2, b2, w3, b3) in the row-major (in, out) convention
    Returns:
      velocity: [B, 1]
    """
    B = x.shape[0]

    # --- replicate (and make robust) the PyTorch dim handling ---
    t = jnp.asarray(t, jnp.float32)
    if t.ndim == 2:
        t = t[:, 0]
    # broadcast scalar t across the batch
    t = jnp.broadcast_to(jnp.atleast_1d(t), (B,))
    # NOTE: a scalar-t fast path (fold w1[1,:]*t into b1 / SMEM scalar) would only
    # remove one broadcast-FMA row now that x/t already share a single DMA stream.

    # stack x and t into one lane-dense (2, B) slab -> single input stream
    xt = jnp.concatenate(
        [x.astype(jnp.float32).reshape(1, B), t.reshape(1, B)], axis=0)

    TB = _choose_batch_tile(B)
    Bp = TB * ((B + TB - 1) // TB)
    if Bp != B:
        xt = jnp.pad(xt, ((0, 0), (0, Bp - B)))

    w1, b1, w2, b2, w3, b3 = (params[k] for k in ("w1", "b1", "w2", "b2", "w3", "b3"))
    H = w1.shape[1]

    # pre-transpose tiny weights for the batch-on-lanes layout (cheap wrapper glue)
    w1t = w1.T                      # (H, 2)
    b1t = b1.reshape(H, 1)          # (H, 1)
    w2t = w2.T                      # (H, H)
    b2t = b2.reshape(H, 1)          # (H, 1)
    w3t = w3.T                      # (1, H)
    b3t = b3.reshape(1, 1)          # (1, 1)

    out = pl.pallas_call(
        _mlp_kernel,
        out_shape=jax.ShapeDtypeStruct((1, Bp), jnp.float32),
        grid_spec=pltpu.PrefetchScalarGridSpec(
            num_scalar_prefetch=0,
            grid=(Bp // TB,),
            in_specs=[
                pl.BlockSpec((2, TB), lambda i: (0, i)),   # [x; t] lane-dense tile
                pl.BlockSpec((H, 2), lambda i: (0, 0)),    # w1^T (VMEM-resident)
                pl.BlockSpec((H, 1), lambda i: (0, 0)),    # b1
                pl.BlockSpec((H, H), lambda i: (0, 0)),    # w2^T
                pl.BlockSpec((H, 1), lambda i: (0, 0)),    # b2
                pl.BlockSpec((1, H), lambda i: (0, 0)),    # w3^T
                pl.BlockSpec((1, 1), lambda i: (0, 0)),    # b3
            ],
            out_specs=pl.BlockSpec((1, TB), lambda i: (0, i)),  # lane-dense output
        ),
        compiler_params=pltpu.CompilerParams(
            dimension_semantics=("parallel",),
        ),
    )(xt, w1t, b1t, w2t, b2t, w3t, b3t)

    # back to [B, 1]; padded lanes hold bias-only garbage and are sliced off here
    return out[0, :B][:, None]


def init_params(key, hidden_dim=HIDDEN_DIM):
    """Deterministic init mimicking torch.nn.Linear defaults (U(-1/sqrt(fan_in), +))."""
    ks = jax.random.split(key, 6)

    def uniform(k, shape, fan_in):
        bound = 1.0 / math.sqrt(fan_in)
        return jax.random.uniform(k, shape, jnp.float32, -bound, bound)

    return {
        "w1": uniform(ks[0], (2, hidden_dim), 2),
        "b1": uniform(ks[1], (1, hidden_dim), 2),
        "w2": uniform(ks[2], (hidden_dim, hidden_dim), hidden_dim),
        "b2": uniform(ks[3], (1, hidden_dim), hidden_dim),
        "w3": uniform(ks[4], (hidden_dim, 1), hidden_dim),
        "b3": uniform(ks[5], (1, 1), hidden_dim),
    }


def _reference(x, t, params):
    """Pure-JAX reference matching the PyTorch module semantics."""
    B = x.shape[0]
    t = jnp.asarray(t, jnp.float32)
    if t.ndim == 2:
        t = t[:, 0]
    t = jnp.broadcast_to(jnp.atleast_1d(t), (B,))[:, None]
    h = jnp.concatenate([x.astype(jnp.float32), t], axis=1)
    h = h @ params["w1"] + params["b1"]
    h = h * jax.nn.sigmoid(h)
    h = h @ params["w2"] + params["b2"]
    h = h * jax.nn.sigmoid(h)
    return h @ params["w3"] + params["b3"]


if __name__ == "__main__":
    key = jax.random.PRNGKey(0)
    kp, kx, kt = jax.random.split(key, 3)

    params = init_params(kp, HIDDEN_DIM)

    batch = 6  # small demo batch; exercises lane padding (Bp = 128, one grid step)
    x = jax.random.normal(kx, (batch, 1), jnp.float32)   # spatial location [B, 1]
    t = jax.random.uniform(kt, (batch,), jnp.float32)    # time [B]

    velocity = jax.block_until_ready(simple_flow_1d(x, t, params))
    ref = _reference(x, t, params)
    assert velocity.shape == (batch, 1), velocity.shape
    assert jnp.allclose(velocity, ref, atol=1e-4, rtol=1e-4), (
        float(jnp.max(jnp.abs(velocity - ref))))

    # scalar-t path (typical in ODE sampling loops)
    t_scalar = jnp.float32(0.37)
    v_scalar = jax.block_until_ready(simple_flow_1d(x, t_scalar, params))
    ref_scalar = _reference(x, t_scalar, params)
    assert v_scalar.shape == (batch, 1), v_scalar.shape
    assert jnp.allclose(v_scalar, ref_scalar, atol=1e-4, rtol=1e-4), (
        float(jnp.max(jnp.abs(v_scalar - ref_scalar))))

    print("KERNEL_OK")
</pallas_src>

<mosaic_0001>
module attributes {stable_mosaic.version = 11 : i64} {
  func.func @_mlp_kernel(%arg0: i32, %arg1: memref<2x128xf32, #tpu.memory_space<vmem>>, %arg2: memref<64x2xf32, #tpu.memory_space<vmem>>, %arg3: memref<64x1xf32, #tpu.memory_space<vmem>>, %arg4: memref<64x64xf32, #tpu.memory_space<vmem>>, %arg5: memref<64x1xf32, #tpu.memory_space<vmem>>, %arg6: memref<1x64xf32, #tpu.memory_space<vmem>>, %arg7: memref<1x1xf32, #tpu.memory_space<vmem>>, %arg8: memref<1x128xf32, #tpu.memory_space<vmem>>) attributes {dimension_semantics = [#tpu.dimension_semantics<parallel>], iteration_bounds = array<i64: 1>, scalar_prefetch = 0 : i64, scratch_operands = 0 : i64, tpu.core_type = #tpu.core_type<tc>, window_params = [{transform_indices = @transform_0, window_bounds = array<i64: 2, 128>}, {pipeline_mode = #tpu.pipeline_mode<synchronous>, transform_indices = @transform_1, window_bounds = array<i64: 64, 2>}, {pipeline_mode = #tpu.pipeline_mode<synchronous>, transform_indices = @transform_2, window_bounds = array<i64: 64, 1>}, {pipeline_mode = #tpu.pipeline_mode<synchronous>, transform_indices = @transform_3, window_bounds = array<i64: 64, 64>}, {pipeline_mode = #tpu.pipeline_mode<synchronous>, transform_indices = @transform_4, window_bounds = array<i64: 64, 1>}, {pipeline_mode = #tpu.pipeline_mode<synchronous>, transform_indices = @transform_5, window_bounds = array<i64: 1, 64>}, {pipeline_mode = #tpu.pipeline_mode<synchronous>, transform_indices = @transform_6, window_bounds = array<i64: 1, 1>}, {transform_indices = @transform_7, window_bounds = array<i64: 1, 128>}]} {
    %c0 = arith.constant 0 : index
    %c0_0 = arith.constant 0 : index
    %0 = vector.load %arg1[%c0, %c0_0] : memref<2x128xf32, #tpu.memory_space<vmem>>, vector<1x128xf32>
    %c1 = arith.constant 1 : index
    %c0_1 = arith.constant 0 : index
    %1 = vector.load %arg1[%c1, %c0_1] : memref<2x128xf32, #tpu.memory_space<vmem>>, vector<1x128xf32>
    %c0_2 = arith.constant 0 : index
    %c0_3 = arith.constant 0 : index
    %2 = vector.load %arg2[%c0_2, %c0_3] : memref<64x2xf32, #tpu.memory_space<vmem>>, vector<64x2xf32>
    %3 = vector.extract_strided_slice %2 {offsets = [0, 0], sizes = [64, 1], strides = [1, 1]} : vector<64x2xf32> to vector<64x1xf32>
    %4 = vector.broadcast %3 : vector<64x1xf32> to vector<64x128xf32>
    %5 = vector.broadcast %0 : vector<1x128xf32> to vector<64x128xf32>
    %6 = arith.mulf %4, %5 : vector<64x128xf32>
    %7 = vector.extract_strided_slice %2 {offsets = [0, 1], sizes = [64, 1], strides = [1, 1]} : vector<64x2xf32> to vector<64x1xf32>
    %8 = vector.broadcast %7 : vector<64x1xf32> to vector<64x128xf32>
    %9 = vector.broadcast %1 : vector<1x128xf32> to vector<64x128xf32>
    %10 = arith.mulf %8, %9 : vector<64x128xf32>
    %11 = arith.addf %6, %10 : vector<64x128xf32>
    %c0_4 = arith.constant 0 : index
    %c0_5 = arith.constant 0 : index
    %12 = vector.load %arg3[%c0_4, %c0_5] : memref<64x1xf32, #tpu.memory_space<vmem>>, vector<64x1xf32>
    %13 = vector.broadcast %12 : vector<64x1xf32> to vector<64x128xf32>
    %14 = arith.addf %11, %13 : vector<64x128xf32>
    %cst = arith.constant 5.000000e-01 : f32
    %15 = vector.broadcast %cst : f32 to vector<64x128xf32>
    %16 = arith.mulf %15, %14 : vector<64x128xf32>
    %17 = math.tanh %16 : vector<64x128xf32>
    %cst_6 = arith.constant 1.000000e+00 : f32
    %18 = vector.broadcast %cst_6 : f32 to vector<64x128xf32>
    %19 = arith.addf %17, %18 : vector<64x128xf32>
    %cst_7 = arith.constant 5.000000e-01 : f32
    %20 = vector.broadcast %cst_7 : f32 to vector<64x128xf32>
    %21 = arith.mulf %20, %19 : vector<64x128xf32>
    %22 = arith.mulf %14, %21 : vector<64x128xf32>
    %c0_8 = arith.constant 0 : index
    %c0_9 = arith.constant 0 : index
    %23 = vector.load %arg4[%c0_8, %c0_9] : memref<64x64xf32, #tpu.memory_space<vmem>>, vector<64x64xf32>
    %cst_10 = arith.constant dense<0.000000e+00> : vector<64x128xf32>
    %24 = tpu.matmul %23, %22, %cst_10 {dimension_numbers = #tpu.dot_dimension_numbers<[1], [0], [0], [1], [0, 0, 1, 1], [], []>} : vector<64x64xf32>, vector<64x128xf32>, vector<64x128xf32> -> vector<64x128xf32>
    %c0_11 = arith.constant 0 : index
    %c0_12 = arith.constant 0 : index
    %25 = vector.load %arg5[%c0_11, %c0_12] : memref<64x1xf32, #tpu.memory_space<vmem>>, vector<64x1xf32>
    %26 = vector.broadcast %25 : vector<64x1xf32> to vector<64x128xf32>
    %27 = arith.addf %24, %26 : vector<64x128xf32>
    %cst_13 = arith.constant 5.000000e-01 : f32
    %28 = vector.broadcast %cst_13 : f32 to vector<64x128xf32>
    %29 = arith.mulf %28, %27 : vector<64x128xf32>
    %30 = math.tanh %29 : vector<64x128xf32>
    %cst_14 = arith.constant 1.000000e+00 : f32
    %31 = vector.broadcast %cst_14 : f32 to vector<64x128xf32>
    %32 = arith.addf %30, %31 : vector<64x128xf32>
    %cst_15 = arith.constant 5.000000e-01 : f32
    %33 = vector.broadcast %cst_15 : f32 to vector<64x128xf32>
    %34 = arith.mulf %33, %32 : vector<64x128xf32>
    %35 = arith.mulf %27, %34 : vector<64x128xf32>
    %c0_16 = arith.constant 0 : index
    %c0_17 = arith.constant 0 : index
    %36 = vector.load %arg6[%c0_16, %c0_17] : memref<1x64xf32, #tpu.memory_space<vmem>>, vector<1x64xf32>
    %cst_18 = arith.constant dense<0.000000e+00> : vector<1x128xf32>
    %37 = tpu.matmul %36, %35, %cst_18 {dimension_numbers = #tpu.dot_dimension_numbers<[1], [0], [0], [1], [0, 0, 1, 1], [], []>} : vector<1x64xf32>, vector<64x128xf32>, vector<1x128xf32> -> vector<1x128xf32>
    %c0_19 = arith.constant 0 : index
    %c0_20 = arith.constant 0 : index
    %38 = vector.load %arg7[%c0_19, %c0_20] : memref<1x1xf32, #tpu.memory_space<vmem>>, vector<1x1xf32>
    %39 = vector.broadcast %38 : vector<1x1xf32> to vector<1x128xf32>
    %40 = arith.addf %37, %39 : vector<1x128xf32>
    %c0_21 = arith.constant 0 : index
    %c0_22 = arith.constant 0 : index
    %41 = vector.load %arg8[%c0_21, %c0_22] : memref<1x128xf32, #tpu.memory_space<vmem>>, vector<1x128xf32>
    tpu.vector_store %arg8[%c0_21, %c0_22], %40 {strides = array<i32>} : memref<1x128xf32, #tpu.memory_space<vmem>>, vector<1x128xf32>,
    return
  }
  func.func @transform_0(%arg0: i32) -> (i32, i32) {
    %c0_i32 = arith.constant 0 : i32
    %c0_i32_0 = arith.constant 0 : i32
    return %c0_i32, %arg0 : i32, i32
  }
  func.func @transform_1(%arg0: i32) -> (i32, i32) {
    %c0_i32 = arith.constant 0 : i32
    %c0_i32_0 = arith.constant 0 : i32
    %c0_i32_1 = arith.constant 0 : i32
    return %c0_i32, %c0_i32_0 : i32, i32
  }
  func.func @transform_2(%arg0: i32) -> (i32, i32) {
    %c0_i32 = arith.constant 0 : i32
    %c0_i32_0 = arith.constant 0 : i32
    %c0_i32_1 = arith.constant 0 : i32
    return %c0_i32, %c0_i32_0 : i32, i32
  }
  func.func @transform_3(%arg0: i32) -> (i32, i32) {
    %c0_i32 = arith.constant 0 : i32
    %c0_i32_0 = arith.constant 0 : i32
    %c0_i32_1 = arith.constant 0 : i32
    return %c0_i32, %c0_i32_0 : i32, i32
  }
  func.func @transform_4(%arg0: i32) -> (i32, i32) {
    %c0_i32 = arith.constant 0 : i32
    %c0_i32_0 = arith.constant 0 : i32
    %c0_i32_1 = arith.constant 0 : i32
    return %c0_i32, %c0_i32_0 : i32, i32
  }
  func.func @transform_5(%arg0: i32) -> (i32, i32) {
    %c0_i32 = arith.constant 0 : i32
    %c0_i32_0 = arith.constant 0 : i32
    %c0_i32_1 = arith.constant 0 : i32
    return %c0_i32, %c0_i32_0 : i32, i32
  }
  func.func @transform_6(%arg0: i32) -> (i32, i32) {
    %c0_i32 = arith.constant 0 : i32
    %c0_i32_0 = arith.constant 0 : i32
    %c0_i32_1 = arith.constant 0 : i32
    return %c0_i32, %c0_i32_0 : i32, i32
  }
  func.func @transform_7(%arg0: i32) -> (i32, i32) {
    %c0_i32 = arith.constant 0 : i32
    %c0_i32_0 = arith.constant 0 : i32
    return %c0_i32, %arg0 : i32, i32
  }
}

</mosaic_0001>

<bundles_post_ra>
// kernel: tpu_custom_call.1
= control target key start
LH: loop header
LB: loop body
LE: loop exit
PB: predicated region body
PF: predicated region fallthrough
CT: control target
= control target key end

     0   :  { %s914_s0 = inlined_call_operand.vmem [shape: f32[2,128], index: 0, kind: input, shape index: {}]   ;;  %s915_s1 = inlined_call_operand.vmem [shape: f32[64,2], index: 1, kind: input, shape index: {}]   ;;  %s916_s2 = inlined_call_operand.vmem [shape: f32[64,1], index: 2, kind: input, shape index: {}]   ;;  %s917_s3 = inlined_call_operand.vmem [shape: f32[64,64], index: 3, kind: input, shape index: {}]   ;;  %s918_s4 = inlined_call_operand.vmem [shape: f32[64,1], index: 4, kind: input, shape index: {}]   ;;  %s919_s5 = inlined_call_operand.vmem [shape: f32[1,64], index: 5, kind: input, shape index: {}]   ;;  %s920_s6 = inlined_call_operand.<no memory space> [shape: f32[1,1], index: 6, kind: input, shape index: {}]   ;;  %s921_s7 = inlined_call_operand.hbm [shape: f32[1,128], index: 7, kind: output, shape index: {}]  }
   0x1   :  { %v12_v0 = vstv %s920_s6 }
   0x2   :  { %13 = vst [vmem:[#allocation2] sm:$0x1] %v12_v0 }
   0x3   :  { %v38_v1 = vld [vmem:[%s915_s1 + $0x38] sm:$0xff]  ;;  %v37_v2 = vld [vmem:[%s915_s1 + $0x30] sm:$0xff]  ;;  %v717_v3 = vmov 1   ;;  %v718_v4 = vmov 0   ;;  %v36_v5 = vld [vmem:[%s915_s1 + $0x28] sm:$0xff] }
   0x4   :  { %652 = vset.pattern.permute.xlu0 %v717_v3  ;;  %653 = vset.pattern.permute.xlu1 %v718_v4  ;;  %v33_v6 = vld [vmem:[%s915_s1 + $0x10] sm:$0xff] }
   0x5   :  { %120 = vperm.xlu0 %652, %v38_v1   ;;  %71 = vperm.xlu1 %653, %v37_v2  }
   0x9   :  { %654 = vset.pattern.permute.xlu1 %v717_v3  ;;  %112 = vperm.xlu0 %652, %v36_v5  }
   0xa   :  { %116 = vperm.xlu1 %654, %v37_v2  }
   0xb   :  { %14 = vsyncpa [#allocation4], 0  ;;  %v32_v7 = vld [vmem:[%s915_s1 + $0x8] sm:$0xff]  ;;  %v150_v8 = vld [vmem:[%s916_s2 + $0x38] sm:$0xff]  ;;  %vm295_vm0 = vcmask 523264   ;;  %vm720_vm1 = vmmov 0  }
   0xc   :  { %v35_v9 = vld [vmem:[%s915_s1 + $0x20] sm:$0xff]  ;;  %v149_v10 = vld [vmem:[%s916_s2 + $0x30] sm:$0xff]  ;;  %v34_v11 = vld [vmem:[%s915_s1 + $0x18] sm:$0xff]  ;;  %s721_s18 = smov [#allocation3]  }
   0xd   :  { %100 = vperm.xlu0 %652, %v33_v6   ;;  %v148_v12 = vld [vmem:[%s916_s2 + $0x28] sm:$0xff]  ;;  %v31_v13 = vld [vmem:[%s915_s1] sm:$0xff]  ;;  %v254_v16 = vld [vmem:[%s918_s4 + $0x38] sm:$0xff]  ;;  %s556_s19 = sshll.u32 %s721_s18, 4  ;;  %s557_s19 = int_to_ptr.vmem [resolvable:$true] %s556_s19 }
   0xe   :  { %655 = vset.pattern.permute.xlu1 %v718_v4  ;;  %v144_v14 = vld [vmem:[%s916_s2 + $0x8] sm:$0xff]  ;;  %v147_v15 = vld [vmem:[%s916_s2 + $0x20] sm:$0xff]  ;;  %v146_v18 = vld [vmem:[%s916_s2 + $0x18] sm:$0xff]  ;;  %s695_s20 = scalar_lea.vmem %s557_s19, 16  ;;  %p700_p1 = scmp.lt.s32.totalorder %s557_s19, %s557_s19 }
   0xf   :  { %66 = vperm.xlu1 %655, %v36_v5   ;;  %v252_v17 = vld [vmem:[%s918_s4 + $0x28] sm:$0xff]  ;;  %v250_v19 = vld [vmem:[%s918_s4 + $0x18] sm:$0xff]  ;;  %v145_v21 = vld [vmem:[%s916_s2 + $0x10] sm:$0xff]  ;;  %p696_p0 = scmp.ne.s32.totalorder %s557_s19, %s695_s20 }
  0x10   :  { %v248_v20 = vld [vmem:[%s918_s4 + $0x8] sm:$0xff]  ;;  %v466_v22 = vld [vmem:[#allocation2] sm:$0x1]  ;;  %v253_v24 = vld [vmem:[%s918_s4 + $0x30] sm:$0xff] }
  0x11   :  { %96 = vperm.xlu0 %652, %v32_v7   ;;  %v143_v23 = vld [vmem:[%s916_s2] sm:$0xff]  ;;  %v249_v26 = vld [vmem:[%s918_s4 + $0x10] sm:$0xff] }
  0x12   :  { %v251_v25 = vld [vmem:[%s918_s4 + $0x20] sm:$0xff] }
  0x13   :  { %188 = vperm.xlu1 %655, %v150_v8   ;;  %v247_v27 = vld [vmem:[%s918_s4] sm:$0xff] }
  0x14   :  { %v239_v28 = vld [vmem:[%s917_s3] sm:$0xff] }
  0x15   :  { %660 = vset.pattern.permute.xlu0 %v718_v4  ;;  %616 = vmatprep.mubr.msk.f32.mxu0 %vm295_vm0, %v239_v28  ;;  %v846_v37 = vld [vmem:[%s914_s0 + $0x1] ss:$0 sm:$0xff]  ;;  %v852_v39 = vld [vmem:[%s914_s0] ss:$0 sm:$0xff] }
  0x16   :  { %76 = vperm.xlu0 %660, %v38_v1  }
  0x17   :  { %656 = vset.pattern.permute.xlu1 %v717_v3 }
  0x18   :  { %108 = vperm.xlu1 %656, %v35_v9  }
  0x1a   :  { %61 = vperm.xlu0 %660, %v35_v9  }
  0x1c   :  { %657 = vset.pattern.permute.xlu1 %v718_v4 }
  0x1d   :  { %183 = vperm.xlu1 %657, %v149_v10  }
  0x1e   :  { %56 = vperm.xlu0 %660, %v34_v11  }
  0x21   :  { %658 = vset.pattern.permute.xlu1 %v717_v3 }
  0x22   :  { %104 = vperm.xlu1 %658, %v34_v11   ;;  %178 = vperm.xlu0 %660, %v148_v12  }
  0x26   :  { %659 = vset.pattern.permute.xlu1 %v718_v4  ;;  %41 = vperm.xlu0 %660, %v31_v13  }
  0x27   :  { %51 = vperm.xlu1 %659, %v33_v6  }
  0x2a   :  { %158 = vperm.xlu0 %660, %v144_v14  }
  0x2b   :  { %173 = vperm.xlu1 %659, %v147_v15  }
  0x2e   :  { %292 = vperm.xlu0 %660, %v254_v16  }
  0x2f   :  { %46 = vperm.xlu1 %659, %v32_v7  }
  0x32   :  { %282 = vperm.xlu0 %660, %v252_v17  }
  0x33   :  { %168 = vperm.xlu1 %659, %v146_v18  }
  0x36   :  { %272 = vperm.xlu0 %660, %v250_v19  }
  0x37   :  { %661 = vset.pattern.permute.xlu1 %v717_v3 }
  0x38   :  { %92 = vperm.xlu1 %661, %v31_v13  }
  0x3a   :  { %262 = vperm.xlu0 %660, %v248_v20  }
  0x3c   :  { %662 = vset.pattern.permute.xlu1 %v718_v4 }
  0x3d   :  { %163 = vperm.xlu1 %662, %v145_v21  }
  0x3e   :  { %469 = vperm.xlu0 %660, %v466_v22  }
  0x41   :  { %153 = vperm.xlu1 %662, %v143_v23  }
  0x45   :  { %287 = vperm.xlu1 %662, %v253_v24  }
  0x49   :  { %277 = vperm.xlu1 %662, %v251_v25  }
  0x4d   :  { %267 = vperm.xlu1 %662, %v249_v26  }
  0x51   :  { %257 = vperm.xlu1 %662, %v247_v27  }
  0x80   :  { %v72_v29 = vpop.permute.xlu1 %71  ;;  %v121_v30 = vpop.permute.xlu0 %120 }
  0x81   :  { %v134_v38 = vmul.f32 %v846_v37, %v121_v30  ;;  %v89_v45 = vmul.f32 %v852_v39, %v72_v29 }
  0x84   :  { %v113_v31 = vpop.permute.xlu0 %112 }
  0x85   :  { %v117_v32 = vpop.permute.xlu1 %116  ;;  %v132_v49 = vmul.f32 %v846_v37, %v113_v31 }
  0x86   :  { %v133_v42 = vmul.f32 %v846_v37, %v117_v32 }
  0x88   :  { %v841_v33 = vpop.permute.xlu0 %100  ;;  %v141_v48 = vadd.f32 %v133_v42, %v89_v45 }
  0x89   :  { %v129_v31 = vmul.f32 %v846_v37, %v841_v33 }
  0x8a   :  { %v67_v34 = vpop.permute.xlu1 %66 }
  0x8b   :  { %v88_v50 = vmul.f32 %v852_v39, %v67_v34 }
  0x8c   :  { %v97_v35 = vpop.permute.xlu0 %96 }
  0x8d   :  { %v140_v56 = vadd.f32 %v132_v49, %v88_v50  ;;  %v128_v12 = vmul.f32 %v846_v37, %v97_v35 }
  0x8e   :  { %v189_v36 = vpop.permute.xlu1 %188 }
  0x91   :  { %v77_v40 = vpop.permute.xlu0 %76 }
  0x92   :  { %v90_v41 = vmul.f32 %v852_v39, %v77_v40 }
  0x93   :  { %v109_v43 = vpop.permute.xlu1 %108 }
  0x94   :  { %v142_v44 = vadd.f32 %v134_v38, %v90_v41  ;;  %v131_v63 = vmul.f32 %v846_v37, %v109_v43 }
  0x95   :  { %v62_v46 = vpop.permute.xlu0 %61 }
  0x96   :  { %v198_v47 = vadd.f32 %v189_v36, %v142_v44  ;;  %v87_v61 = vmul.f32 %v852_v39, %v62_v46 }
  0x98   :  { %v184_v51 = vpop.permute.xlu1 %183  ;;  %v206_v52 = vmul.f32 0.5, %v198_v47  ;;  %v139_v0 = vadd.f32 %v131_v63, %v87_v61  ;;  %v240_v63 = vld [vmem:[%s917_s3 + $0x8] sm:$0xff] }
  0x99   :  { %v197_v53 = vadd.f32 %v184_v51, %v141_v48  ;;  %v57_v54 = vpop.permute.xlu0 %56 }
  0x9a   :  { %663 = vtanh.f32 %v206_v52  ;;  %v86_v5 = vmul.f32 %v852_v39, %v57_v54 }
  0x9b   :  { %v205_v55 = vmul.f32 0.5, %v197_v53 }
  0x9d   :  { %665 = vtanh.f32 %v205_v55  ;;  %v105_v57 = vpop.permute.xlu1 %104  ;;  %v179_v58 = vpop.permute.xlu0 %178 }
  0x9e   :  { %v196_v59 = vadd.f32 %v179_v58, %v140_v56  ;;  %v130_v6 = vmul.f32 %v846_v37, %v105_v57 }
  0xa0   :  { %v204_v60 = vmul.f32 0.5, %v196_v59  ;;  %v138_v18 = vadd.f32 %v130_v6, %v86_v5  ;;  %v246_v5 = vld [vmem:[%s917_s3 + $0x38] sm:$0xff]  ;;  %v719_v6 = vmov 0.0  }
  0xa1   :  { %v42_v9 = vpop.permute.xlu0 %41  ;;  %628 = vmatprep.subr.mxu1 %v719_v6  ;;  %644 = vmatprep.mubr.msk.f32.mxu1 %vm720_vm1, %v719_v6 }
  0xa2   :  { %667 = vtanh.f32 %v204_v60  ;;  %v52_v62 = vpop.permute.xlu1 %51  ;;  %v83_v40 = vmul.f32 %v852_v39, %v42_v9 }
  0xa3   :  { %v85_v28 = vmul.f32 %v852_v39, %v52_v62 }
  0xa5   :  { %v159_v24 = vpop.permute.xlu0 %158  ;;  %v137_v35 = vadd.f32 %v129_v31, %v85_v28 }
  0xa6   :  { %v174_v1 = vpop.permute.xlu1 %173 }
  0xa7   :  { %v664_v2 = vpop.eup %663  ;;  %v195_v3 = vadd.f32 %v174_v1, %v139_v0  ;;  %v241_v0 = vld [vmem:[%s917_s3 + $0x10] sm:$0xff]  ;;  %v242_v1 = vld [vmem:[%s917_s3 + $0x18] sm:$0xff] }
  0xa8   :  { %v222_v4 = vadd.f32 1.0, %v664_v2  ;;  %v243_v2 = vld [vmem:[%s917_s3 + $0x20] sm:$0xff] }
  0xa9   :  { %v203_v7 = vmul.f32 0.5, %v195_v3 }
  0xaa   :  { %v666_v8 = vpop.eup %665  ;;  %v47_v10 = vpop.permute.xlu1 %46  ;;  %v230_v11 = vmul.f32 0.5, %v222_v4  ;;  %v245_v4 = vld [vmem:[%s917_s3 + $0x30] sm:$0xff] }
  0xab   :  { %v221_v13 = vadd.f32 1.0, %v666_v8  ;;  %669 = vtanh.f32 %v203_v7  ;;  %v84_v14 = vmul.f32 %v852_v39, %v47_v10  ;;  %v293_v7 = vpop.permute.xlu0 %292 }
  0xac   :  { %v238_v15 = vmul.f32 %v230_v11, %v198_v47 }
  0xad   :  { %v229_v16 = vmul.f32 0.5, %v221_v13  ;;  %v136_v17 = vadd.f32 %v128_v12, %v84_v14 }
  0xae   :  { %v169_v19 = vpop.permute.xlu1 %168  ;;  %600 = vmatprep.subr.mxu0 %v238_v15 }
  0xaf   :  { %v668_v20 = vpop.eup %667  ;;  %v237_v21 = vmul.f32 %v229_v16, %v197_v53  ;;  %v194_v22 = vadd.f32 %v169_v19, %v138_v18  ;;  %601 = vmatpush3.msra.mxu0 %v238_v15  ;;  %v192_v25 = vadd.f32 %v159_v24, %v136_v17  ;;  %v283_v10 = vpop.permute.xlu0 %282 }
  0xb0   :  { %v220_v23 = vadd.f32 1.0, %v668_v20 }
  0xb1   :  { %v202_v26 = vmul.f32 0.5, %v194_v22  ;;  %602 = vmatprep.subr.mxu0 %v237_v21  ;;  %v200_v32 = vmul.f32 0.5, %v192_v25 }
  0xb2   :  { %v228_v27 = vmul.f32 0.5, %v220_v23  ;;  %603 = vmatpush3.msra.mxu0 %v237_v21 }
  0xb3   :  { %v93_v29 = vpop.permute.xlu1 %92  ;;  %671 = vtanh.f32 %v202_v26  ;;  %v273_v15 = vpop.permute.xlu0 %272 }
  0xb4   :  { %v236_v30 = vmul.f32 %v228_v27, %v196_v59  ;;  %v127_v34 = vmul.f32 %v846_v37, %v93_v29  ;;  %673 = vtanh.f32 %v200_v32 }
  0xb6   :  { %604 = vmatprep.subr.mxu0 %v236_v30  ;;  %v135_v45 = vadd.f32 %v127_v34, %v83_v40 }
  0xb7   :  { %605 = vmatpush3.msra.mxu0 %v236_v30  ;;  %v263_v27 = vpop.permute.xlu0 %262 }
  0xb8   :  { %v670_v36 = vpop.eup %669  ;;  %v164_v38 = vpop.permute.xlu1 %163 }
  0xb9   :  { %v219_v41 = vadd.f32 1.0, %v670_v36  ;;  %v193_v42 = vadd.f32 %v164_v38, %v137_v35 }
  0xbb   :  { %v227_v43 = vmul.f32 0.5, %v219_v41  ;;  %v201_v44 = vmul.f32 0.5, %v193_v42 }
  0xbc   :  { %v154_v46 = vpop.permute.xlu1 %153 }
  0xbd   :  { %v235_v47 = vmul.f32 %v227_v43, %v195_v3  ;;  %675 = vtanh.f32 %v201_v44  ;;  %v191_v33 = vadd.f32 %v154_v46, %v135_v45  ;;  %v244_v3 = vld [vmem:[%s917_s3 + $0x28] sm:$0xff] }
  0xbf   :  { %v199_v48 = vmul.f32 0.5, %v191_v33  ;;  %606 = vmatprep.subr.mxu0 %v235_v47 }
  0xc0   :  { %607 = vmatpush3.msra.mxu0 %v235_v47  ;;  %v672_v37 = vpop.eup %671  ;;  %v288_v8 = vpop.permute.xlu1 %287 }
  0xc1   :  { %677 = vtanh.f32 %v199_v48  ;;  %v218_v49 = vadd.f32 1.0, %v672_v37  ;;  %v674_v51 = vpop.eup %673 }
  0xc2   :  { %v216_v39 = vadd.f32 1.0, %v674_v51 }
  0xc3   :  { %v226_v50 = vmul.f32 0.5, %v218_v49 }
  0xc4   :  { %v224_v56 = vmul.f32 0.5, %v216_v39  ;;  %v278_v12 = vpop.permute.xlu1 %277 }
  0xc5   :  { %v234_v52 = vmul.f32 %v226_v50, %v194_v22 }
  0xc6   :  { %v232_v61 = vmul.f32 %v224_v56, %v192_v25 }
  0xc7   :  { %608 = vmatprep.subr.mxu0 %v234_v52 }
  0xc8   :  { %609 = vmatpush3.msra.mxu0 %v234_v52  ;;  %v268_v18 = vpop.permute.xlu1 %267 }
  0xca   :  { %v676_v53 = vpop.eup %675 }
  0xcb   :  { %v217_v54 = vadd.f32 1.0, %v676_v53 }
  0xcc   :  { %v258_v34 = vpop.permute.xlu1 %257 }
  0xcd   :  { %v225_v55 = vmul.f32 0.5, %v217_v54 }
  0xce   :  { %v678_v57 = vpop.eup %677 }
  0xcf   :  { %v233_v58 = vmul.f32 %v225_v55, %v193_v42  ;;  %v215_v59 = vadd.f32 1.0, %v678_v57 }
  0xd1   :  { %v223_v60 = vmul.f32 0.5, %v215_v59  ;;  %610 = vmatprep.subr.mxu0 %v233_v58 }
  0xd2   :  { %611 = vmatpush3.msra.mxu0 %v233_v58 }
  0xd3   :  { %v231_v62 = vmul.f32 %v223_v60, %v191_v33  ;;  %612 = vmatprep.subr.mxu0 %v232_v61 }
  0xd4   :  { %613 = vmatpush3.msra.mxu0 %v232_v61 }
  0xd5   :  { %614 = vmatprep.subr.mxu0 %v231_v62 }
  0xd6   :  { %615 = vmatpush3.msra.mxu0 %v231_v62 }
  0xd7   :  { %617 = vmatmul.mubr.msk.f32.vlgmr.msra.gmra.mxu0 %vm295_vm0, %v240_v63 }
  0xd8   :  { %619 = vmatprep.mubr.msk.f32.mxu0 %vm295_vm0, %v241_v0 }
  0xdb   :  { %620 = vmatmul.mubr.msk.f32.gmra.mxu0 %vm295_vm0, %v242_v1 }
  0xdc   :  { %622 = vmatprep.mubr.msk.f32.mxu0 %vm295_vm0, %v243_v2 }
  0xdf   :  { %623 = vmatmul.mubr.msk.f32.gmra.mxu0 %vm295_vm0, %v244_v3 }
  0xe0   :  { %625 = vmatprep.mubr.msk.f32.mxu0 %vm295_vm0, %v245_v4 }
  0xe3   :  { %626 = vmatmul.mubr.msk.f32.gmra.mxu0 %vm295_vm0, %v246_v5 }
 0x197   :  { %v618_v9 = vpop.f32.mrf.mxu0 }
 0x198   :  { %v392_v30 = vadd.f32 %v618_v9, %v263_v27  ;;  %v472_v9 = vlaneseq }
 0x199   :  { %v386_v11 = vpop.f32.mrf.mxu0 }
 0x19a   :  { %v387_v35 = vadd.f32 %v386_v11, %v258_v34  ;;  %v426_v40 = vmul.f32 0.5, %v392_v30 }
 0x19b   :  { %v621_v13 = vpop.f32.mrf.mxu0 }
 0x19c   :  { %v402_v19 = vadd.f32 %v621_v13, %v273_v15  ;;  %v425_v41 = vmul.f32 0.5, %v387_v35 }
 0x19d   :  { %v396_v14 = vpop.f32.mrf.mxu0 }
 0x19e   :  { %v397_v24 = vadd.f32 %v396_v14, %v268_v18  ;;  %v428_v28 = vmul.f32 0.5, %v402_v19 }
 0x19f   :  { %v624_v16 = vpop.f32.mrf.mxu0 }
 0x1a0   :  { %v412_v17 = vadd.f32 %v624_v16, %v283_v10  ;;  %v427_v36 = vmul.f32 0.5, %v397_v24  ;;  %v473_v10 = vshrl.u32 %v472_v9, 7 }
 0x1a1   :  { %v406_v20 = vpop.f32.mrf.mxu0 }
 0x1a2   :  { %v430_v21 = vmul.f32 0.5, %v412_v17  ;;  %v407_v22 = vadd.f32 %v406_v20, %v278_v12  ;;  %v474_v11 = vsub.s32 0, %v473_v10  ;;  %v470_v12 = vpop.permute.xlu0 %469 }
 0x1a3   :  { %v627_v23 = vpop.f32.mrf.mxu0 }
 0x1a4   :  { %v429_v25 = vmul.f32 0.5, %v407_v22  ;;  %v422_v26 = vadd.f32 %v627_v23, %v293_v7  ;;  %679 = vtanh.f32 %v430_v21  ;;  %v475_v13 = vrot.slane %v470_v12, %v474_v11 }
 0x1a5   :  { %v416_v29 = vpop.f32.mrf.mxu0 }
 0x1a6   :  { %v432_v31 = vmul.f32 0.5, %v422_v26  ;;  %v417_v32 = vadd.f32 %v416_v29, %v288_v8  ;;  %681 = vtanh.f32 %v429_v25  ;;  %v465_v8 = vld [vmem:[%s919_s5] sm:$0x1]  ;;  %s699_s5 = scalar_lea.vmem %s557_s19, 32 }
 0x1a7   :  { %p701_p2 = scmp.lt.s32.totalorder %s699_s5, %s695_s20 }
 0x1a8   :  { %683 = vtanh.f32 %v432_v31  ;;  %v431_v38 = vmul.f32 0.5, %v417_v32 }
 0x1a9   :  { %685 = vtanh.f32 %v428_v28  ;;  %p702_p3 = por %p701_p2, %p700_p1 }
 0x1aa   :  { %687 = vtanh.f32 %v431_v38 }
 0x1ab   :  { %689 = vtanh.f32 %v427_v36  ;;  %p703_p4 = pnand %p702_p3, %p696_p0 }
 0x1ac   :  { %691 = vtanh.f32 %v426_v40 }
 0x1ad   :  { %693 = vtanh.f32 %v425_v41 }
 0x1b1   :  { %v680_v42 = vpop.eup %679 }
 0x1b2   :  { %v446_v46 = vadd.f32 1.0, %v680_v42 }
 0x1b3   :  { %v682_v43 = vpop.eup %681 }
 0x1b4   :  { %v445_v48 = vadd.f32 1.0, %v682_v43  ;;  %v454_v52 = vmul.f32 0.5, %v446_v46 }
 0x1b5   :  { %v684_v44 = vpop.eup %683 }
 0x1b6   :  { %v686_v45 = vpop.eup %685  ;;  %v448_v47 = vadd.f32 1.0, %v684_v44  ;;  %v453_v56 = vmul.f32 0.5, %v445_v48  ;;  %v462_v61 = vmul.f32 %v454_v52, %v412_v17 }
 0x1b7   :  { %v688_v33 = vpop.eup %687  ;;  %v444_v51 = vadd.f32 1.0, %v686_v45 }
 0x1b8   :  { %v447_v37 = vadd.f32 1.0, %v688_v33  ;;  %v456_v49 = vmul.f32 0.5, %v448_v47  ;;  %v690_v50 = vpop.eup %689  ;;  %v461_v0 = vmul.f32 %v453_v56, %v407_v22 }
 0x1b9   :  { %v692_v54 = vpop.eup %691  ;;  %v443_v55 = vadd.f32 1.0, %v690_v50  ;;  %v452_v60 = vmul.f32 0.5, %v444_v51 }
 0x1ba   :  { %v455_v39 = vmul.f32 0.5, %v447_v37  ;;  %v464_v53 = vmul.f32 %v456_v49, %v422_v26  ;;  %v694_v58 = vpop.eup %693  ;;  %v442_v59 = vadd.f32 1.0, %v692_v54 }
 0x1bb   :  { %v441_v62 = vadd.f32 1.0, %v694_v58  ;;  %v451_v63 = vmul.f32 0.5, %v443_v55  ;;  %v460_v2 = vmul.f32 %v452_v60, %v402_v19 }
 0x1bc   :  { %v463_v57 = vmul.f32 %v455_v39, %v417_v32  ;;  %629 = vmatpush3.msra.mxu1 %v464_v53  ;;  %v450_v1 = vmul.f32 0.5, %v442_v59 }
 0x1bd   :  { %630 = vmatprep.subr.mxu1 %v719_v6  ;;  %v449_v3 = vmul.f32 0.5, %v441_v62  ;;  %v459_v4 = vmul.f32 %v451_v63, %v397_v24 }
 0x1be   :  { %631 = vmatpush3.msra.mxu1 %v463_v57  ;;  %v458_v5 = vmul.f32 %v450_v1, %v392_v30 }
 0x1bf   :  { %632 = vmatprep.subr.mxu1 %v719_v6  ;;  %v457_v7 = vmul.f32 %v449_v3, %v387_v35 }
 0x1c0   :  { %633 = vmatpush3.msra.mxu1 %v462_v61 }
 0x1c1   :  { %634 = vmatprep.subr.mxu1 %v719_v6 }
 0x1c2   :  { %635 = vmatpush3.msra.mxu1 %v461_v0 }
 0x1c3   :  { %636 = vmatprep.subr.mxu1 %v719_v6 }
 0x1c4   :  { %637 = vmatpush3.msra.mxu1 %v460_v2 }
 0x1c5   :  { %638 = vmatprep.subr.mxu1 %v719_v6 }
 0x1c6   :  { %639 = vmatpush3.msra.mxu1 %v459_v4 }
 0x1c7   :  { %640 = vmatprep.subr.mxu1 %v719_v6 }
 0x1c8   :  { %641 = vmatpush3.msra.mxu1 %v458_v5 }
 0x1c9   :  { %642 = vmatprep.subr.mxu1 %v719_v6 }
 0x1ca   :  { %643 = vmatpush3.msra.mxu1 %v457_v7 }
 0x1cb   :  { %645 = vmatmul.mubr.msk.f32.vlgmr.msra.gmra.mxu1 %vm295_vm0, %v465_v8 }
 0x28b   :  { %v545_v14 = vpop.f32.mrf.mxu1 }
 0x28c   :  { %v546_v15 = vadd.f32 %v545_v14, %v475_v13 }
 0x28d   :  { %v646_v16 = vpop.f32.mrf.mxu1 }
 0x28e   :  { %549 = vst [vmem:[#allocation3] sm:$0x1] %v546_v15 }
 0x28f   :  { %706 = shalt.err (!%p703_p4)
}
 0x290   :  { %559 = dma.vmem_to_hbm [thread:$0]  %s557_s19, 16, %s921_s7, [#allocation4]  }
 0x291   :  { %715 = dma.done.wait [#allocation4], 16  }
 0x292   :  { %716 = vsyncadd [#allocation4], 4294967280 }
 0x293   :  { %563 = vsyncpa [#allocation4], 1 }

</bundles_post_ra>
